<compile_context>
chip_gen: v7x
topology: tpu7x:2x2x1
jax: 0.10.0
libtpu: 0.0.40
codegen_flags: <defaults>
</compile_context>

<pallas_src>
import math

import jax
import jax.numpy as jnp
import numpy as np
from jax.experimental import pallas as pl
from jax.experimental.pallas import tpu as pltpu


def _round8(n):
    return ((n + 7) // 8) * 8


# ----------------------------- Pallas kernel ---------------------------------
def _conv_gemm_kernel(xm_ref, xh_ref, wm_ref, wh_ref, b_ref, o_ref):
    # Split Toeplitz GEMM: main (G packed positions) + (K-1)-position halo.
    # bf16 operands, f32 MXU accumulation, f32 epilogue (v5e has no bf16 VPU path).
    acc = jnp.dot(xm_ref[...], wm_ref[...], preferred_element_type=jnp.float32)
    acc = acc + jnp.dot(xh_ref[...], wh_ref[...], preferred_element_type=jnp.float32)
    o_ref[...] = (acc + b_ref[...]).astype(o_ref.dtype)


# ----------------------- one-time parameter setup -----------------------------
def _factor_to_dense(params_slice, R_shape):
    """Densify one deformable-butterfly factor into its (out_size, in_size) matrix.
    Equivalent linear map to: (t * x.view(blk,1,col,diag)).sum(dim=col)."""
    output_size, input_size, row, col, diag = R_shape
    blocks = input_size // (col * diag)
    t = params_slice.reshape(blocks, diag, row, col).transpose(0, 2, 3, 1)  # (blk,row,col,diag)
    eye = jnp.eye(diag, dtype=t.dtype)
    blk = jnp.einsum('brcd,de->brdce', t, eye).reshape(blocks, row * diag, col * diag)
    return jax.scipy.linalg.block_diag(*[blk[i] for i in range(blocks)])    # (out,in)


def build_debut_conv_params(twiddle, bias, R_shapes, kernel_size, c_in, c_out):
    """One-time setup (hoisted out of the hot path): densify + fuse the butterfly
    chain, Toeplitz-expand it over a packed window of G + K - 1 positions, split it
    into main/halo weight matrices and pack the bias to the 128-wide output layout."""
    # TODO(synk): for configs where K*c_in*c_out makes compute dominant, replace the
    # zero-filled Toeplitz GEMM with K shifted (tile, c_in)@(c_in, c_out) accumulating
    # matmuls (useful FLOPs only) or a chained per-factor in-kernel path.
    W = None
    p = 0
    for R in R_shapes:
        output_size, _, _, col, _ = R
        num_p = col * output_size
        Wm_t = _factor_to_dense(twiddle[p:p + num_p], R).T          # (in_m, out_m)
        W = Wm_t if W is None else jnp.dot(W, Wm_t,
                                           precision=jax.lax.Precision.HIGHEST)
        p += num_p
    # W: (kernel_size*c_in, c_out); input feature index = k*c_in + c
    assert W.shape == (kernel_size * c_in, c_out)

    G = 128 // math.gcd(128, c_out)     # conv positions packed per row (lane-dense out)
    KH = max(kernel_size - 1, 1)        # halo positions (>= 1 dummy zero block if K==1)
    N_out = G * c_out                   # multiple of 128 -> unmasked stores
    Km, Kh = G * c_in, KH * c_in        # true contraction widths (no 128 padding)
    Km_p, Kh_p = _round8(Km), _round8(Kh)   # only sublane-align (tiny zero pad)

    # Toeplitz expansion: W_big[(g+k)*c_in + c, g*c_out + o] = W[k*c_in + c, o]
    W_big = jnp.zeros((Km + Kh, N_out), jnp.float32)
    for g in range(G):
        W_big = W_big.at[g * c_in:(g + kernel_size) * c_in,
                         g * c_out:(g + 1) * c_out].set(W)
    W_main = jnp.zeros((Km_p, N_out), jnp.float32).at[:Km].set(W_big[:Km])
    W_halo = jnp.zeros((Kh_p, N_out), jnp.float32).at[:Kh].set(W_big[Km:])
    b_packed = jnp.tile(bias, G).reshape(1, N_out).astype(jnp.float32)
    return {"W_main": W_main.astype(jnp.bfloat16),
            "W_halo": W_halo.astype(jnp.bfloat16),
            "b_packed": b_packed,
            "G": G, "KH": KH, "Km": Km, "Kh": Kh,
            "Km_p": Km_p, "Kh_p": Kh_p, "N_out": N_out}


# ------------------------------- forward pass ---------------------------------
def debut_1dconv(x, params, kernel_size, padding=0):
    # stride=1 / dilation=1, matching what F.unfold uses in the reference module.
    batch, c_in, l = x.shape
    l_out = l + 2 * padding - (kernel_size - 1)
    G, KH = params["G"], params["KH"]
    Km, Kh = params["Km"], params["Kh"]
    Km_p, Kh_p, N_out = params["Km_p"], params["Kh_p"], params["N_out"]
    W_main, W_halo, b_packed = params["W_main"], params["W_halo"], params["b_packed"]
    c_out = N_out // G

    # --- glue: one transpose+pad+bf16 pass; main input is just a reshape of the
    #     padded activations, halo is a small ((K-1)/G fraction) gather. No im2col.
    n_sr = pl.cdiv(l_out, G)                 # packed rows per batch element
    L_main = n_sr * G
    x_t = jnp.transpose(x, (0, 2, 1)).astype(jnp.bfloat16)           # (b, l, c_in)
    x_pad = jnp.pad(x_t, ((0, 0), (padding, L_main + KH - l - padding), (0, 0)))
    x_main = x_pad[:, :L_main, :].reshape(batch * n_sr, Km)
    halo_idx = (jnp.arange(n_sr) + 1)[:, None] * G + jnp.arange(KH)[None, :]
    x_halo = x_pad[:, halo_idx, :].reshape(batch * n_sr, Kh)

    # --- row tiling: large tiles, VMEM-budgeted against an explicit limit ---
    n_rows = batch * n_sr
    vmem_limit = 32 << 20        # raises v5e's 16 MiB default; safe on v7x (64 MiB phys)

    def _tile_bytes(tm):
        return (2 * tm * (Km_p + Kh_p) * 2        # bf16 activation tiles (double-buffered)
                + 2 * tm * N_out * 4              # f32 output tiles (double-buffered)
                + 2 * (Km_p + Kh_p) * N_out * 2   # grid-invariant weights (2-buffered)
                + 2 * N_out * 4                   # bias
                + tm * N_out * 4)                 # in-kernel f32 accumulator

    tile_m = 1024
    while tile_m > 8 and _tile_bytes(tile_m) > (vmem_limit * 3) // 4:
        tile_m //= 2
    # keep >= 2 grid steps when rows allow (megacore/2-TC sharding on v7x)
    tile_m = min(tile_m, max(8, _round8(pl.cdiv(n_rows, 2))))
    n_pad = pl.cdiv(n_rows, tile_m) * tile_m
    x_main = jnp.pad(x_main, ((0, n_pad - n_rows), (0, Km_p - Km)))
    x_halo = jnp.pad(x_halo, ((0, n_pad - n_rows), (0, Kh_p - Kh)))

    flops = 2 * n_pad * (Km_p + Kh_p) * N_out
    bytes_accessed = (2 * (n_pad * (Km_p + Kh_p) + (Km_p + Kh_p) * N_out)
                      + 4 * (N_out + n_pad * N_out))

    y = pl.pallas_call(
        _conv_gemm_kernel,
        out_shape=jax.ShapeDtypeStruct((n_pad, N_out), jnp.float32),
        grid=(n_pad // tile_m,),
        in_specs=[
            pl.BlockSpec((tile_m, Km_p), lambda i: (i, 0)),
            pl.BlockSpec((tile_m, Kh_p), lambda i: (i, 0)),
            pl.BlockSpec((Km_p, N_out), lambda i: (0, 0)),
            pl.BlockSpec((Kh_p, N_out), lambda i: (0, 0)),
            pl.BlockSpec((1, N_out), lambda i: (0, 0)),
        ],
        out_specs=pl.BlockSpec((tile_m, N_out), lambda i: (i, 0)),
        compiler_params=pltpu.CompilerParams(
            dimension_semantics=("parallel",),
            vmem_limit_bytes=vmem_limit),
        cost_estimate=pl.CostEstimate(flops=flops, transcendentals=0,
                                      bytes_accessed=bytes_accessed),
    )(x_main, x_halo, W_main, W_halo, b_packed)

    # --- unpack lane-packed rows back to (batch, c_out, l_out) ---
    y = y[:n_rows].reshape(batch, n_sr * G, c_out)[:, :l_out, :]
    return jnp.transpose(y, (0, 2, 1))


# ---------------- pure-JAX reference (mirrors the PyTorch code) ----------------
def _debut_mult_ref(X, twiddle, R_shapes):
    out = X
    p = 0
    for R in R_shapes:
        output_size, input_size, row, col, diag = R
        num_p = col * output_size
        blocks = input_size // (col * diag)
        t = twiddle[p:p + num_p].reshape(blocks, diag, row, col).transpose(0, 2, 3, 1)
        xr = out.reshape(-1, blocks, 1, col, diag)
        out = (t[None] * xr).sum(axis=3)
        p += num_p
    return out.reshape(X.shape[0], output_size)


def _reference(x, twiddle, bias, R_shapes, kernel_size, padding=0):
    batch, c_in, l = x.shape
    l_out = l + 2 * padding - (kernel_size - 1)
    x_pad = jnp.pad(x, ((0, 0), (0, 0), (padding, padding)))
    patches = jnp.stack([x_pad[:, :, k:k + l_out] for k in range(kernel_size)], axis=2)
    patches = jnp.transpose(patches, (0, 3, 2, 1))
    X = patches.reshape(batch * l_out, kernel_size * c_in)
    y = _debut_mult_ref(X, twiddle, R_shapes) + bias
    return jnp.transpose(y.reshape(batch, l_out, R_shapes[-1][0]), (0, 2, 1))


if __name__ == "__main__":
    # Module config: DeBut_1dConv(input_channel=4, output_channel=8, kernel_size=4,
    #                             padding=0, R_shapes=[[32,16,2,1,1],[8,32,1,4,2]], bias=True)
    batch, c_in, l = 2, 4, 16
    kernel_size, padding = 4, 0
    c_out = 8
    R_shapes = [[32, 16, 2, 1, 1], [8, 32, 1, 4, 2]]   # chain: 16 -> 32 -> 8
    in_size = c_in * kernel_size
    num_params = int(sum(R[0] * R[3] for R in R_shapes))

    key = jax.random.PRNGKey(0)
    kx, kt, kb = jax.random.split(key, 3)
    x = jax.random.normal(kx, (batch, c_in, l), dtype=jnp.float32)
    # twiddle ~ randn * 1/sqrt(2)  (deterministic stand-in for the torch init)
    twiddle = jax.random.normal(kt, (num_params,), dtype=jnp.float32) * (1.0 / math.sqrt(2))
    # bias ~ U(-1/sqrt(in_size), 1/sqrt(in_size))
    bound = 1.0 / math.sqrt(in_size)
    bias = jax.random.uniform(kb, (c_out,), minval=-bound, maxval=bound, dtype=jnp.float32)

    # one-time weight setup (hoisted out of the conv call path)
    params = build_debut_conv_params(twiddle, bias, R_shapes, kernel_size, c_in, c_out)

    y = debut_1dconv(x, params, kernel_size, padding)
    y = jax.block_until_ready(y)

    y_ref = _reference(x, twiddle, bias, R_shapes, kernel_size, padding)
    assert y.shape == (batch, c_out, l - kernel_size + 1), y.shape
    # bf16 activations/weights (f32 accumulate) -> relaxed tolerance vs the f32 reference.
    np.testing.assert_allclose(np.asarray(y), np.asarray(y_ref), rtol=2e-2, atol=2e-2)
    print("KERNEL_OK")
</pallas_src>

<mosaic_0001>
module attributes {stable_mosaic.version = 11 : i64} {
  func.func @_conv_gemm_kernel(%arg0: i32, %arg1: memref<8x64xbf16, #tpu.memory_space<vmem>>, %arg2: memref<8x16xbf16, #tpu.memory_space<vmem>>, %arg3: memref<64x128xbf16, #tpu.memory_space<vmem>>, %arg4: memref<16x128xbf16, #tpu.memory_space<vmem>>, %arg5: memref<1x128xf32, #tpu.memory_space<vmem>>, %arg6: memref<8x128xf32, #tpu.memory_space<vmem>>) attributes {dimension_semantics = [#tpu.dimension_semantics<parallel>], iteration_bounds = array<i64: 1>, scalar_prefetch = 0 : i64, scratch_operands = 0 : i64, tpu.core_type = #tpu.core_type<tc>, window_params = [{transform_indices = @transform_0, window_bounds = array<i64: 8, 64>}, {transform_indices = @transform_1, window_bounds = array<i64: 8, 16>}, {pipeline_mode = #tpu.pipeline_mode<synchronous>, transform_indices = @transform_2, window_bounds = array<i64: 64, 128>}, {pipeline_mode = #tpu.pipeline_mode<synchronous>, transform_indices = @transform_3, window_bounds = array<i64: 16, 128>}, {pipeline_mode = #tpu.pipeline_mode<synchronous>, transform_indices = @transform_4, window_bounds = array<i64: 1, 128>}, {transform_indices = @transform_5, window_bounds = array<i64: 8, 128>}]} {
    %c0 = arith.constant 0 : index
    %c0_0 = arith.constant 0 : index
    %0 = vector.load %arg1[%c0, %c0_0] : memref<8x64xbf16, #tpu.memory_space<vmem>>, vector<8x64xbf16>
    %c0_1 = arith.constant 0 : index
    %c0_2 = arith.constant 0 : index
    %1 = vector.load %arg3[%c0_1, %c0_2] : memref<64x128xbf16, #tpu.memory_space<vmem>>, vector<64x128xbf16>
    %cst = arith.constant dense<0.000000e+00> : vector<8x128xf32>
    %2 = tpu.matmul %0, %1, %cst {dimension_numbers = #tpu.dot_dimension_numbers<[1], [0], [0], [1], [0, 0, 1, 1], [], []>} : vector<8x64xbf16>, vector<64x128xbf16>, vector<8x128xf32> -> vector<8x128xf32>
    %c0_3 = arith.constant 0 : index
    %c0_4 = arith.constant 0 : index
    %3 = vector.load %arg2[%c0_3, %c0_4] : memref<8x16xbf16, #tpu.memory_space<vmem>>, vector<8x16xbf16>
    %c0_5 = arith.constant 0 : index
    %c0_6 = arith.constant 0 : index
    %4 = vector.load %arg4[%c0_5, %c0_6] : memref<16x128xbf16, #tpu.memory_space<vmem>>, vector<16x128xbf16>
    %cst_7 = arith.constant dense<0.000000e+00> : vector<8x128xf32>
    %5 = tpu.matmul %3, %4, %cst_7 {dimension_numbers = #tpu.dot_dimension_numbers<[1], [0], [0], [1], [0, 0, 1, 1], [], []>} : vector<8x16xbf16>, vector<16x128xbf16>, vector<8x128xf32> -> vector<8x128xf32>
    %6 = arith.addf %2, %5 : vector<8x128xf32>
    %c0_8 = arith.constant 0 : index
    %c0_9 = arith.constant 0 : index
    %7 = vector.load %arg5[%c0_8, %c0_9] : memref<1x128xf32, #tpu.memory_space<vmem>>, vector<1x128xf32>
    %8 = vector.broadcast %7 : vector<1x128xf32> to vector<8x128xf32>
    %9 = arith.addf %6, %8 : vector<8x128xf32>
    %c0_10 = arith.constant 0 : index
    %c0_11 = arith.constant 0 : index
    %10 = vector.load %arg6[%c0_10, %c0_11] : memref<8x128xf32, #tpu.memory_space<vmem>>, vector<8x128xf32>
    tpu.vector_store %arg6[%c0_10, %c0_11], %9 {strides = array<i32>} : memref<8x128xf32, #tpu.memory_space<vmem>>, vector<8x128xf32>,
    return
  }
  func.func @transform_0(%arg0: i32) -> (i32, i32) {
    %c0_i32 = arith.constant 0 : i32
    %c0_i32_0 = arith.constant 0 : i32
    return %arg0, %c0_i32 : i32, i32
  }
  func.func @transform_1(%arg0: i32) -> (i32, i32) {
    %c0_i32 = arith.constant 0 : i32
    %c0_i32_0 = arith.constant 0 : i32
    return %arg0, %c0_i32 : i32, i32
  }
  func.func @transform_2(%arg0: i32) -> (i32, i32) {
    %c0_i32 = arith.constant 0 : i32
    %c0_i32_0 = arith.constant 0 : i32
    %c0_i32_1 = arith.constant 0 : i32
    return %c0_i32, %c0_i32_0 : i32, i32
  }
  func.func @transform_3(%arg0: i32) -> (i32, i32) {
    %c0_i32 = arith.constant 0 : i32
    %c0_i32_0 = arith.constant 0 : i32
    %c0_i32_1 = arith.constant 0 : i32
    return %c0_i32, %c0_i32_0 : i32, i32
  }
  func.func @transform_4(%arg0: i32) -> (i32, i32) {
    %c0_i32 = arith.constant 0 : i32
    %c0_i32_0 = arith.constant 0 : i32
    %c0_i32_1 = arith.constant 0 : i32
    return %c0_i32, %c0_i32_0 : i32, i32
  }
  func.func @transform_5(%arg0: i32) -> (i32, i32) {
    %c0_i32 = arith.constant 0 : i32
    %c0_i32_0 = arith.constant 0 : i32
    return %arg0, %c0_i32 : i32, i32
  }
}

</mosaic_0001>

<bundles_post_ra>
// kernel: tpu_custom_call.1
= control target key start
LH: loop header
LB: loop body
LE: loop exit
PB: predicated region body
PF: predicated region fallthrough
CT: control target
= control target key end

     0   :  { %10 = vsyncpa [#allocation3], 0  ;;  %s446_s0 = inlined_call_operand.hbm [shape: bf16[8,64], index: 0, kind: input, shape index: {}]   ;;  %s447_s1 = inlined_call_operand.hbm [shape: bf16[8,16], index: 1, kind: input, shape index: {}]   ;;  %s448_s2 = inlined_call_operand.hbm [shape: bf16[64,128], index: 2, kind: input, shape index: {}]   ;;  %s449_s3 = inlined_call_operand.vmem [shape: bf16[16,128], index: 3, kind: input, shape index: {}]   ;;  %s450_s4 = inlined_call_operand.vmem [shape: f32[1,128], index: 4, kind: input, shape index: {}]   ;;  %s451_s5 = inlined_call_operand.hbm [shape: f32[8,128], index: 5, kind: output, shape index: {}]  }
   0x1   :  { %11 = vsyncpa [#allocation6], 0 }
   0x2   :  { %12 = vsyncpa [#allocation4], 0  ;;  %s354_s18 = smov [#allocation5]   ;;  %s355_s20 = smov [#allocation2]  }
   0x3   :  { %s29_s19 = sshll.u32 %s354_s18, 4  ;;  %s19_s21 = sshll.u32 %s355_s20, 4  ;;  %s30_s19 = int_to_ptr.vmem [resolvable:$true] %s29_s19  ;;  %s20_s21 = int_to_ptr.vmem [resolvable:$true] %s19_s21 }
   0x4   :  { %s260_s24 = scalar_lea.hbm %s447_s1, 64 }
   0x5   :  { %p261_p0 = scmp.ne.s32.totalorder %s447_s1, %s260_s24  ;;  %p264_p1 = scmp.lt.u32.totalorder %s260_s24, %s447_s1 }
   0x7   :  { %p266_p2 = pnand %p264_p1, %p261_p0 }
   0x9   :  { %269 = shalt.err (!%p266_p2)
}
   0xa   :  { %s270_s29 = scalar_lea.vmem %s30_s19, 64  ;;  %p275_p4 = scmp.lt.s32.totalorder %s30_s19, %s30_s19 }
   0xb   :  { %p271_p3 = scmp.ne.s32.totalorder %s30_s19, %s270_s29  ;;  %p276_p5 = scmp.lt.s32.totalorder %s270_s29, %s270_s29 }
   0xd   :  { %p277_p6 = por %p276_p5, %p275_p4 }
   0xf   :  { %p278_p7 = pnand %p277_p6, %p271_p3 }
  0x11   :  { %281 = shalt.err (!%p278_p7)
}
  0x12   :  { %32 = dma.hbm_to_vmem [thread:$0]  %s447_s1, 64, %s30_s19, [#allocation6]  }
  0x13   :  { %s282_s9 = scalar_lea.hbm %s446_s0, 64 }
  0x14   :  { %p283_p8 = scmp.ne.s32.totalorder %s446_s0, %s282_s9  ;;  %p286_p9 = scmp.lt.u32.totalorder %s282_s9, %s446_s0 }
  0x16   :  { %p288_p10 = pnand %p286_p9, %p283_p8 }
  0x18   :  { %291 = shalt.err (!%p288_p10)
}
  0x19   :  { %s292_s14 = scalar_lea.vmem %s20_s21, 64  ;;  %p297_p12 = scmp.lt.s32.totalorder %s20_s21, %s20_s21 }
  0x1a   :  { %p293_p11 = scmp.ne.s32.totalorder %s20_s21, %s292_s14  ;;  %p298_p13 = scmp.lt.s32.totalorder %s292_s14, %s292_s14 }
  0x1c   :  { %p299_p0 = por %p298_p13, %p297_p12 }
  0x1e   :  { %p300_p1 = pnand %p299_p0, %p293_p11 }
  0x20   :  { %303 = shalt.err (!%p300_p1)
}
  0x21   :  { %22 = dma.hbm_to_vmem [thread:$0]  %s446_s0, 64, %s20_s21, [#allocation3]  }
  0x22   :  { %s356_s16 = smov [#allocation7]   ;;  %s304_s20 = scalar_lea.hbm %s448_s2, 512 }
  0x23   :  { %s38_s17 = sshll.u32 %s356_s16, 4  ;;  %p305_p2 = scmp.ne.s32.totalorder %s448_s2, %s304_s20  ;;  %s39_s17 = int_to_ptr.vmem [resolvable:$true] %s38_s17 }
  0x24   :  { %p308_p3 = scmp.lt.u32.totalorder %s304_s20, %s448_s2 }
  0x26   :  { %p310_p4 = pnand %p308_p3, %p305_p2 }
  0x28   :  { %313 = shalt.err (!%p310_p4)
}
  0x29   :  { %s314_s26 = scalar_lea.vmem %s39_s17, 512  ;;  %p319_p6 = scmp.lt.s32.totalorder %s39_s17, %s39_s17 }
  0x2a   :  { %p315_p5 = scmp.ne.s32.totalorder %s39_s17, %s314_s26  ;;  %p320_p7 = scmp.lt.s32.totalorder %s314_s26, %s314_s26 }
  0x2c   :  { %p321_p8 = por %p320_p7, %p319_p6 }
  0x2e   :  { %p322_p9 = pnand %p321_p8, %p315_p5 }
  0x30   :  { %325 = shalt.err (!%p322_p9)
}
  0x31   :  { %s357_s0 = smov 64   ;;  %s358_s21 = smov 4  }
  0x32   :  { %44 = dma.hbm_to_vmem [thread:$0]  %s448_s2, 512, %s39_s17, [#allocation6], %s357_s0, %s357_s0, %s358_s21  }
  0x33   :  { %348 = dma.done.wait [#allocation3], 64  }
  0x34   :  { %349 = vsyncadd [#allocation3], 4294967232 }
  0x35   :  { %350 = dma.done.wait [#allocation6], 576  }
  0x36   :  { %351 = vsyncadd [#allocation6], 4294966720  ;;  %v359_v0 = vmov 0.0   ;;  %vm360_vm0 = vmmov 0   ;;  %v255_v1 = vld [vmem:[#allocation7] sm:$0xff]   ;;  %v256_v2 = vld [vmem:[#allocation7 + $0x8] sm:$0xff]  }
  0x37   :  { %235 = vmatprep.subr.bf16.mxu1 %v359_v0  ;;  %229 = vmatprep.subr.bf16.mxu0 %v359_v0  ;;  %v258_v3 = vld [vmem:[%s449_s3] sm:$0xff]   ;;  %v68_v4 = vld [vmem:[#allocation5] sm:$0xf]  ;;  %vm77_vm1 = vcmask 130048   ;;  %v59_v7 = vld [vmem:[#allocation2] sm:$0xf] }
  0x38   :  { %231 = vmatprep.mubr.msk.bf16.mxu0 %vm360_vm0, %v359_v0  ;;  %243 = vmatprep.mubr.msk.bf16.mxu1 %vm360_vm0, %v359_v0  ;;  %v257_v5 = vld [vmem:[#allocation7 + $0x10] sm:$0xff]   ;;  %v259_v6 = vld [vmem:[#allocation7 + $0x18] sm:$0xff]   ;;  %vm145_vm2 = vcmask 523264   ;;  %s361_s6 = smov [#allocation8]  }
  0x39   :  { %236 = vmatpush3.bf16.msra.mxu1 %v255_v1  ;;  %230 = vmatpush3.bf16.msra.mxu0 %v258_v3  ;;  %v221_v13 = vld [vmem:[%s450_s4] ss:$0 sm:$0xff]  ;;  %s204_s7 = sshll.u32 %s361_s6, 4  ;;  %s205_s7 = int_to_ptr.vmem [resolvable:$true] %s204_s7 }
  0x3a   :  { %237 = vmatprep.subr.bf16.mxu1 %v359_v0  ;;  %s326_s8 = scalar_lea.vmem %s205_s7, 128  ;;  %p331_p11 = scmp.lt.s32.totalorder %s205_s7, %s205_s7 }
  0x3b   :  { %p327_p10 = scmp.ne.s32.totalorder %s205_s7, %s326_s8  ;;  %p332_p12 = scmp.lt.s32.totalorder %s326_s8, %s326_s8 }
  0x3c   :  { %232 = vmatmul.mubr.msk.bf16.vlgmr.msra.gmra.mrb[0].mxu0 %vm77_vm1, %v68_v4 }
  0x3d   :  { %238 = vmatpush3.bf16.msra.mxu1 %v256_v2  ;;  %p333_p13 = por %p332_p12, %p331_p11 }
  0x3e   :  { %239 = vmatprep.subr.bf16.mxu1 %v359_v0 }
  0x3f   :  { %p334_p0 = pnand %p333_p13, %p327_p10 }
  0x41   :  { %240 = vmatpush3.bf16.msra.mxu1 %v257_v5 }
  0x42   :  { %241 = vmatprep.subr.bf16.mxu1 %v359_v0 }
  0x45   :  { %242 = vmatpush3.bf16.msra.mxu1 %v259_v6 }
  0x48   :  { %244 = vmatmul.mubr.msk.bf16.vlgmr.msra.gmra.mrb[0].mxu1 %vm145_vm2, %v59_v7 }
 0x10f   :  { %v115_v8 = vpop.f32.mrb[0].mxu0 }
 0x110   :  { %v233_v9 = vpop.f32.mrb[1].mxu0 }
 0x111   :  { %v118_v10 = vpop.f32.mrb[2].mxu0 }
 0x112   :  { %v234_v11 = vpop.f32.mrb[3].mxu0 }
 0x11b   :  { %v183_v12 = vpop.f32.mrb[0].mxu1 }
 0x11c   :  { %v184_v14 = vadd.f32 %v183_v12, %v115_v8  ;;  %v245_v15 = vpop.f32.mrb[1].mxu1 }
 0x11d   :  { %v186_v16 = vpop.f32.mrb[2].mxu1 }
 0x11e   :  { %v196_v17 = vadd.f32 %v221_v13, %v184_v14  ;;  %v246_v18 = vpop.f32.mrb[3].mxu1 }
 0x120   :  { %197 = vst [vmem:[#allocation8] sm:$0xff] %v196_v17 }
 0x121   :  { %337 = shalt.err (!%p334_p0)
}
 0x122   :  { %s338_s4 = scalar_lea.hbm %s451_s5, 128 }
 0x123   :  { %p339_p1 = scmp.ne.s32.totalorder %s451_s5, %s338_s4  ;;  %p342_p2 = scmp.lt.u32.totalorder %s338_s4, %s451_s5 }
 0x125   :  { %p344_p3 = pnand %p342_p2, %p339_p1 }
 0x127   :  { %347 = shalt.err (!%p344_p3)
}
 0x128   :  { %207 = dma.vmem_to_hbm [thread:$0]  %s205_s7, 128, %s451_s5, [#allocation4]  }
 0x129   :  { %352 = dma.done.wait [#allocation4], 128  }
 0x12a   :  { %353 = vsyncadd [#allocation4], 4294967168 }
 0x12b   :  { %211 = vsyncpa [#allocation3], 1 }
 0x12c   :  { %212 = vsyncpa [#allocation6], 1 }
 0x12d   :  { %213 = vsyncpa [#allocation4], 1 }

</bundles_post_ra>
